<compile_context>
chip_gen: v5e
topology: v5e:2x2
jax: 0.10.0
libtpu: 0.0.40
codegen_flags: <defaults>
</compile_context>

<pallas_src>
import numpy as np
import jax
import jax.numpy as jnp
from jax.experimental import pallas as pl
from jax.experimental.pallas import tpu as pltpu

ALPHA = 4.0
MU = 0.15
SIGMA = 0.017
DT_SCALE = 0.1


def generate_kernel(channels: int, radius: int) -> jnp.ndarray:
    """Deterministic Lenia ring kernel, identical to Rule.generate_kernel()."""
    Rk = 2 * radius + 1
    lin = np.linspace(-1.0, 1.0, Rk, dtype=np.float32)
    xm, ym = np.meshgrid(lin, lin, indexing="ij")        # torch.meshgrid default 'ij'
    rm = np.sqrt(xm ** 2 + ym ** 2)
    rm1 = np.where(rm <= 1.0 - 1e-6, rm, np.zeros_like(rm))
    with np.errstate(divide="ignore", invalid="ignore"):
        u = ALPHA * (1.0 - 1.0 / (4.0 * rm1 * (1.0 - rm1)))   # -inf where rm1 == 0
    k = np.exp(u)                                              # exp(-inf) -> 0
    k = k / k.sum()
    K = np.broadcast_to(k, (1, channels, Rk, Rk)).copy()       # repeat(1, C, 1, 1)
    return jnp.asarray(K, dtype=jnp.float32)


def _circulant_matrix(k2d: np.ndarray, H: int, W: int, radius: int) -> np.ndarray:
    """(H*W, H*W) matrix Mt with  circular_conv2d(s, k2d).ravel() == s.ravel() @ Mt.

    All (2R+1)^2 taps are folded in (no zero-skipping), and overlapping wraps
    accumulate, so this is exact for any kernel values / radii.
    """
    R = radius
    Rk = 2 * R + 1
    HW = H * W
    ii, jj = np.meshgrid(np.arange(H), np.arange(W), indexing="ij")
    p = (ii * W + jj).ravel()                                  # output flat index
    Mt = np.zeros((HW, HW), dtype=np.float32)                  # Mt[src, dst]
    for ki in range(Rk):
        for kj in range(Rk):
            q = (((ii + ki - R) % H) * W + ((jj + kj - R) % W)).ravel()
            np.add.at(Mt, (q, p), np.float32(k2d[ki, kj]))
    return Mt


def _vmem_limits():
    """(vmem_limit_bytes, blocking_budget_bytes) derived from the actual chip."""
    try:
        cap = int(pltpu.get_tpu_info().vmem_capacity_bytes)
    except Exception:
        cap = None
    if cap is None:
        limit = 48 * 1024 * 1024            # known-safe on every current TPU
    elif cap <= 64 * 1024 * 1024:           # v7x-class: 64 MiB physical per TC
        limit = cap // 2                    # ~32 MiB scoped
    else:                                   # v5e / v6e: 128 MiB physical
        limit = 96 * 1024 * 1024
    budget = (limit * 3) // 4               # headroom for compiler scratch/spills
    return limit, budget


def _choose_batch_block(N: int, C: int, HW: int, budget_bytes: int) -> int:
    """Images per grid step: >=2 steps when N>=2 (v7x megacore + DMA overlap),
    ~<=4 MiB per stream per step for pipelining, and within the VMEM budget."""
    stream_bytes = 4 * C * HW                                  # one f32 image/stream

    def per_step_bytes(nb):
        return (2 * 2 * nb * stream_bytes                      # in + out, double-buffered
                + 2 * 4 * HW * HW                              # resident circulant matrix
                + 8 * nb * (C + 4) * HW)                       # value temporaries (s, y, g, out)

    min_steps = 2 if N >= 2 else 1
    divisors = [d for d in range(1, N + 1) if N % d == 0]
    feasible = [d for d in divisors
                if (N // d) >= min_steps and per_step_bytes(d) <= budget_bytes]
    if not feasible:
        return 1
    small = [d for d in feasible if d * stream_bytes <= 4 * 1024 * 1024]
    return max(small) if small else min(feasible)


def lenia_step(x: jnp.ndarray, K: jnp.ndarray, radius: int) -> jnp.ndarray:
    """One Lenia CA update. x: (N, C, H, W) float32, K: (1, C, 2R+1, 2R+1)."""
    N, C, H, W = x.shape
    R = radius
    Rk = 2 * R + 1
    HW = H * W
    assert 2 * R <= min(H, W), "circular pad requires pad <= spatial dim"

    # ---- bake K into a circulant matrix (requires a concrete kernel) ----
    try:
        Knp = np.asarray(jax.device_get(K), dtype=np.float32).reshape(C, Rk, Rk)
    except Exception as e:
        raise ValueError(
            "lenia_step bakes K into a constant circulant matrix at trace time; "
            "pass a concrete (non-traced) kernel, e.g. close over it outside jit."
        ) from e

    # Rule.generate_kernel() repeats one 2-D ring across channels; then the
    # C*(2R+1)^2-tap conv collapses to (channel sum) @ single-ring circulant.
    channel_identical = bool(np.array_equal(Knp, np.broadcast_to(Knp[0], Knp.shape)))
    if channel_identical:
        Mt_np = _circulant_matrix(Knp[0], H, W, R)                        # (HW, HW)
    else:
        Mt_np = np.concatenate(
            [_circulant_matrix(Knp[c], H, W, R) for c in range(C)], axis=0)  # (C*HW, HW)
    Mt = jnp.asarray(Mt_np)

    vmem_limit, vmem_budget = _vmem_limits()
    nb = _choose_batch_block(N, C, HW, vmem_budget)
    grid = (N // nb,)

    inv_2s2 = 1.0 / (2.0 * SIGMA * SIGMA)

    def kernel(x_ref, m_ref, o_ref):
        xv = x_ref[...]                                       # (nb, C, HW) f32, lane-dense
        if channel_identical:
            s = jnp.sum(xv, axis=1)                           # (nb, HW) channel sum (tree)
        else:
            s = xv.reshape(nb, C * HW)
        # circular 2-D conv == one MXU matmul; no pad scratch, no slice copies
        y = jnp.dot(s, m_ref[...], preferred_element_type=jnp.float32)   # (nb, HW)
        # growth: 2*exp(-(y-mu)^2 / (2 sigma^2)) - 1   (exp goes to the EUP slot)
        d = y - MU
        g = 2.0 * jnp.exp(d * d * (-inv_2s2)) - 1.0
        # dt broadcasts over channels; full-width unmasked lane-dense store
        o_ref[...] = jnp.clip(xv + DT_SCALE * g[:, None, :], 0.0, 1.0)

    out_flat = pl.pallas_call(
        kernel,
        out_shape=jax.ShapeDtypeStruct((N, C, HW), x.dtype),
        grid=grid,
        in_specs=[
            pl.BlockSpec((nb, C, HW), lambda n: (n, 0, 0)),
            pl.BlockSpec(Mt.shape, lambda n: (0, 0)),   # same block every step -> resident
        ],
        out_specs=pl.BlockSpec((nb, C, HW), lambda n: (n, 0, 0)),
        compiler_params=pltpu.CompilerParams(
            dimension_semantics=("parallel",),
            vmem_limit_bytes=int(vmem_limit),
        ),
    )(x.reshape(N, C, HW), Mt)

    return out_flat.reshape(N, C, H, W)


def lenia_ref(x, K, radius):
    """Pure-JAX reference (mirrors the PyTorch forward) for correctness check."""
    A = jnp.pad(x, ((0, 0), (0, 0), (radius, radius), (radius, radius)), mode="wrap")
    y = jax.lax.conv_general_dilated(
        A, K, window_strides=(1, 1), padding="VALID",
        dimension_numbers=("NCHW", "OIHW", "NCHW"))
    g = 2.0 * jnp.exp(-jnp.abs(y - MU) ** 2 / (2.0 * SIGMA ** 2)) - 1.0
    return jnp.clip(x + DT_SCALE * g, 0.0, 1.0)


if __name__ == "__main__":
    CHANNELS, RADIUS = 4, 2
    N, H, W = 2, 16, 16

    key = jax.random.PRNGKey(0)
    x = jax.random.uniform(key, (N, CHANNELS, H, W), dtype=jnp.float32)  # initGrid ~ U[0,1)
    K = generate_kernel(CHANNELS, RADIUS)

    out = jax.block_until_ready(lenia_step(x, K, RADIUS))
    ref = jax.block_until_ready(lenia_ref(x, K, RADIUS))

    assert out.shape == (N, CHANNELS, H, W)
    np.testing.assert_allclose(np.asarray(out), np.asarray(ref), atol=1e-5, rtol=1e-5)

    print("KERNEL_OK")
</pallas_src>

<mosaic_0001>
module attributes {stable_mosaic.version = 11 : i64} {
  func.func @kernel(%arg0: i32, %arg1: memref<1x4x256xf32, #tpu.memory_space<vmem>>, %arg2: memref<256x256xf32, #tpu.memory_space<vmem>>, %arg3: memref<1x4x256xf32, #tpu.memory_space<vmem>>) attributes {dimension_semantics = [#tpu.dimension_semantics<parallel>], iteration_bounds = array<i64: 2>, scalar_prefetch = 0 : i64, scratch_operands = 0 : i64, tpu.core_type = #tpu.core_type<tc>, window_params = [{transform_indices = @transform_0, window_bounds = array<i64: 1, 4, 256>}, {pipeline_mode = #tpu.pipeline_mode<synchronous>, transform_indices = @transform_1, window_bounds = array<i64: 256, 256>}, {transform_indices = @transform_2, window_bounds = array<i64: 1, 4, 256>}]} {
    %c0 = arith.constant 0 : index
    %c0_0 = arith.constant 0 : index
    %c0_1 = arith.constant 0 : index
    %0 = vector.load %arg1[%c0, %c0_0, %c0_1] : memref<1x4x256xf32, #tpu.memory_space<vmem>>, vector<1x4x256xf32>
    %cst = arith.constant dense<0.000000e+00> : vector<1x256xf32>
    %1 = vector.multi_reduction <add>, %0, %cst [1] : vector<1x4x256xf32> to vector<1x256xf32>
    %c0_2 = arith.constant 0 : index
    %c0_3 = arith.constant 0 : index
    %2 = vector.load %arg2[%c0_2, %c0_3] : memref<256x256xf32, #tpu.memory_space<vmem>>, vector<256x256xf32>
    %cst_4 = arith.constant dense<0.000000e+00> : vector<1x256xf32>
    %3 = tpu.matmul %1, %2, %cst_4 {dimension_numbers = #tpu.dot_dimension_numbers<[1], [0], [0], [1], [0, 0, 1, 1], [], []>} : vector<1x256xf32>, vector<256x256xf32>, vector<1x256xf32> -> vector<1x256xf32>
    %cst_5 = arith.constant 1.500000e-01 : f32
    %4 = vector.broadcast %cst_5 : f32 to vector<1x256xf32>
    %5 = arith.subf %3, %4 : vector<1x256xf32>
    %6 = arith.mulf %5, %5 : vector<1x256xf32>
    %cst_6 = arith.constant -1730.10376 : f32
    %7 = vector.broadcast %cst_6 : f32 to vector<1x256xf32>
    %8 = arith.mulf %6, %7 : vector<1x256xf32>
    %9 = math.exp %8 : vector<1x256xf32>
    %cst_7 = arith.constant 2.000000e+00 : f32
    %10 = vector.broadcast %cst_7 : f32 to vector<1x256xf32>
    %11 = arith.mulf %10, %9 : vector<1x256xf32>
    %cst_8 = arith.constant 1.000000e+00 : f32
    %12 = vector.broadcast %cst_8 : f32 to vector<1x256xf32>
    %13 = arith.subf %11, %12 : vector<1x256xf32>
    %14 = vector.shape_cast %13 : vector<1x256xf32> to vector<1x1x256xf32>
    %cst_9 = arith.constant 1.000000e-01 : f32
    %15 = vector.broadcast %cst_9 : f32 to vector<1x1x256xf32>
    %16 = arith.mulf %15, %14 : vector<1x1x256xf32>
    %17 = vector.broadcast %16 : vector<1x1x256xf32> to vector<1x4x256xf32>
    %18 = arith.addf %0, %17 : vector<1x4x256xf32>
    %cst_10 = arith.constant 0.000000e+00 : f32
    %cst_11 = arith.constant 1.000000e+00 : f32
    %19 = vector.broadcast %cst_10 : f32 to vector<1x4x256xf32>
    %20 = arith.maximumf %19, %18 : vector<1x4x256xf32>
    %21 = vector.broadcast %cst_11 : f32 to vector<1x4x256xf32>
    %22 = arith.minimumf %21, %20 : vector<1x4x256xf32>
    %c0_12 = arith.constant 0 : index
    %c0_13 = arith.constant 0 : index
    %c0_14 = arith.constant 0 : index
    %23 = vector.load %arg3[%c0_12, %c0_13, %c0_14] : memref<1x4x256xf32, #tpu.memory_space<vmem>>, vector<1x4x256xf32>
    tpu.vector_store %arg3[%c0_12, %c0_13, %c0_14], %22 {strides = array<i32>} : memref<1x4x256xf32, #tpu.memory_space<vmem>>, vector<1x4x256xf32>,
    return
  }
  func.func @transform_0(%arg0: i32) -> (i32, i32, i32) {
    %c0_i32 = arith.constant 0 : i32
    %c0_i32_0 = arith.constant 0 : i32
    %c0_i32_1 = arith.constant 0 : i32
    return %arg0, %c0_i32, %c0_i32_0 : i32, i32, i32
  }
  func.func @transform_1(%arg0: i32) -> (i32, i32) {
    %c0_i32 = arith.constant 0 : i32
    %c0_i32_0 = arith.constant 0 : i32
    %c0_i32_1 = arith.constant 0 : i32
    return %c0_i32, %c0_i32_0 : i32, i32
  }
  func.func @transform_2(%arg0: i32) -> (i32, i32, i32) {
    %c0_i32 = arith.constant 0 : i32
    %c0_i32_0 = arith.constant 0 : i32
    %c0_i32_1 = arith.constant 0 : i32
    return %arg0, %c0_i32, %c0_i32_0 : i32, i32, i32
  }
}

</mosaic_0001>

<bundles_post_ra>
// kernel: tpu_custom_call.1
= control target key start
LH: loop header
LB: loop body
LE: loop exit
PB: predicated region body
PF: predicated region fallthrough
CT: control target
= control target key end

     0   :  { %7 = vsyncpa [#allocation3], 0  ;;  %s854_s0 = inlined_call_operand.hbm [shape: f32[2,4,256], index: 0, kind: input, shape index: {}]   ;;  %s855_s1 = inlined_call_operand.hbm [shape: f32[256,256], index: 1, kind: input, shape index: {}]   ;;  %s856_s2 = inlined_call_operand.hbm [shape: f32[2,4,256], index: 2, kind: output, shape index: {}]  }
   0x1   :  { %9 = vsyncpa [#allocation3 + $0x1], 0 }
   0x2   :  { %10 = vsyncpa [#allocation6], 0 }
   0x3   :  { %11 = vsyncpa [#allocation4], 0 }
   0x4   :  { %13 = vsyncpa [#allocation4 + $0x1], 0  ;;  %s704_s9 = smov 0   ;;  %s706_s10 = smov 0  }
   0x5   :  { %s708_s11 = smov 0   ;;  %s710_s12 = smov 0  }
   0x6 LB: > { %s108_s15 = sshll.u32 %s855_s1, 4  ;;  %s728_s16 = sadd.s32 4294967295, %s684_s12   ;;  %s684_s12 = sphi %s710_s12, %s866_s12   ;;  %s680_s11 = sphi %s708_s11, %s865_s11   ;;  %s676_s10 = sphi %s706_s10, %s864_s10   ;;  %s672_s9 = sphi %s704_s9, %s863_s9   ;;  %s109_s15 = int_to_ptr.hbm [resolvable:$true] %s108_s15 }
   0x7   : > { %p470_p0 = scmp.ge.s32.totalorder %s684_s12, 1  ;;  %p40_p1 = scmp.eq.s32.totalorder %s728_s16, 0 }
   0x8   : > { %p97_p2 = scmp.lt.s32.totalorder %s684_s12, 3  ;;  %s686_s18 = smov [#allocation5]  }
   0x9   : > { %s110_s19 = sshll.u32 %s686_s18, 4  ;;  %s687_s20 = smov 256   ;;  %s111_s19 = int_to_ptr.vmem [resolvable:$true] %s110_s19 }
   0xa   : > { %p733_p3 = pnand %p470_p0, %p97_p2  ;;  %s688_s21 = smov 16  }
   0xb   : > { %s469_s22 = sadd.s32 4294967294, %s684_s12   ;;  %s744_s23 = sadd.s32 1, %s684_s12  }
   0xc   : > { %p499_p4 = pneg %p733_p3  ;;  %s26_s24 = sadd.s32 1, %s680_s11 }
   0xd   : > { %s23_s25 = ssub.s32 %s684_s12, %s744_s23  ;;  %p33_p7 = scmp.ne.s32.totalorder %s680_s11, %s676_s10 }
   0xe   : > { %p500_p6 = pnand %p499_p4, %p40_p1  ;;  %p24_p8 = scmp.eq.s32.totalorder %s23_s25, 0 }
   0xf   : > { %p34_p9 = scmp.eq.s32.totalorder %s684_s12, 0  ;;  %p39_p10 = scmp.ne.s32.totalorder %s676_s10, %s672_s9 }
  0x10   : > { %502 = dma.hbm_to_vmem [thread:$0]  (!%p500_p6), %s109_s15, 8192, %s111_s19, [#allocation6], %s687_s20, %s687_s20, %s688_s21  }
  0x11   : > { %p84_p11 = scmp.eq.s32.totalorder %s728_s16, 1  ;;  %p760_p12 = por %p40_p1, %p39_p10 }
  0x12   : > { %s756_s26 = scalar_select %p24_p8, %s680_s11, %s26_s24  }
  0x13   : > { %p764_p13 = por %p84_p11, %p33_p7  ;;  %p90_p0 = scmp.eq.s32.totalorder %s469_s22, 1 }
  0x14   : > { %p35_p2 = por %p34_p9, %p33_p7  ;;  %s124_s29 = sand.u32 1, %s680_s11  }
  0x15   : > { %p769_p4 = por %p90_p0, %p39_p10  ;;  %p512_p6 = scmp.lt.s32.totalorder %s684_s12, 2 }
  0x16   : > { %s473_s3 = sshll.u32 %s124_s29, 3  ;;  %s489_s4 = sshll.u32 %s684_s12, 3 }
  0x17   : > { %s133_s7 = scalar_lea.hbm %s854_s0, %s489_s4  ;;  %s128_s13 = scalar_lea.vmem [#allocation2], %s473_s3 }
  0x18   : > { %s135_s8 = sshll.u32 %s133_s7, 4  ;;  %s137_s14 = sshll.u32 %s128_s13, 4  ;;  %s136_s8 = int_to_ptr.hbm [resolvable:$true] %s135_s8  ;;  %s138_s14 = int_to_ptr.vmem [resolvable:$true] %s137_s14 }
  0x19   : > { %p778_p8 = pnand %p512_p6, %p35_p2  ;;  %s125_s18 = scalar_lea.sflag [#allocation3], %s124_s29 }
  0x1a   : > { %s584_s19 = sshra.s32 %s136_s8, 4  ;;  %s591_s24 = scalar_lea.hbm %s854_s0, 16  ;;  %s585_s19 = int_to_ptr.hbm [resolvable:$true] %s584_s19 }
  0x1b   : > { %s586_s20 = scalar_lea.hbm %s585_s19, 8  ;;  %p588_p9 = pneg %p778_p8 }
  0x1c   : > { %p587_p7 = scmp.ne.s32.totalorder %s585_s19, %s586_s20  ;;  %p592_p0 = scmp.lt.s32.totalorder %s585_s19, %s854_s0 }
  0x1d   : > { %p593_p2 = scmp.lt.s32.totalorder %s591_s24, %s586_s20 }
  0x1e   : > { %p589_p10 = pnand %p588_p9, %p587_p7 }
  0x1f   : > { %p594_p6 = por %p593_p2, %p592_p0 }
  0x20   : > { %p590_p11 = pneg %p589_p10 }
  0x22   : > { %p595_p5 = pnand %p594_p6, %p590_p11 }
  0x24   : > { %598 = shalt.err (!%p595_p5)
}
  0x25   : > { %506 = dma.hbm_to_vmem [thread:$0]  (!%p778_p8), %s136_s8, 128, %s138_s14, %s125_s18  }
  0x26   : > { %146 = sbr.rel (%p733_p3) target bundleno = 251 (0xfb), region = 28  ;;  %s795_s29 = sand.u32 (!%p733_p3), 1, %s676_s10  }
  0x27   : > { %s477_s4 = sshll.u32 (!%p733_p3), %s795_s29, 3  ;;  %s149_s5 = scalar_lea.sflag (!%p733_p3), [#allocation3], %s795_s29 }
  0x28   : > { %s801_s6 = scalar_lea.vmem (!%p733_p3), [#allocation2], %s477_s4 }
  0x2b   : > { %659 = dma.done.wait (%p760_p12), %s149_s5, 128  }
  0x2c   : > { %661 = vsyncadd (%p760_p12), %s149_s5, 4294967168 }
  0x2d   : > { %663 = dma.done.wait (%p40_p1), [#allocation6], 8192  }
  0x2e   : > { %665 = vsyncadd (%p40_p1), [#allocation6], 4294959104  ;;  %v232_v0 = vld [vmem:[#allocation5 + $0xf8] sm:$0xff]  ;;  %v230_v2 = vld [vmem:[#allocation5 + $0xe8] sm:$0xff]  ;;  %vm186_vm0 = vcmask 1043456   ;;  %s490_s17 = sshll.u32 %s728_s16, 3 }
  0x2f   : > { %v264_v1 = vld [vmem:[#allocation5 + $0x1f8] sm:$0xff]  ;;  %305 = vmatpush.msra.mxu2 %v232_v0  ;;  %v262_v3 = vld [vmem:[#allocation5 + $0x1e8] sm:$0xff]  ;;  %v231_v6 = vld [vmem:[#allocation5 + $0xf0] sm:$0xff]  ;;  %s384_s8 = scalar_lea.hbm %s856_s2, %s490_s17  ;;  %s178_s13 = scalar_lea.vmem [#allocation7], %s477_s4 }
  0x30   : > { %325 = vmatpush.msra.mxu3 %v264_v1  ;;  %v228_v4 = vld [vmem:[#allocation5 + $0xd8] sm:$0xff]  ;;  %v226_v7 = vld [vmem:[#allocation5 + $0xc8] sm:$0xff]  ;;  %v263_v8 = vld [vmem:[#allocation5 + $0x1f0] sm:$0xff]  ;;  %265 = vmatpush.msra.mxu0 %v231_v6  ;;  %s386_s14 = sshll.u32 %s178_s13, 4  ;;  %s388_s15 = sshll.u32 %s384_s8, 4  ;;  %s387_s14 = int_to_ptr.vmem [resolvable:$true] %s386_s14  ;;  %s389_s15 = int_to_ptr.hbm [resolvable:$true] %s388_s15 }
  0x31   : > { %v260_v5 = vld [vmem:[#allocation5 + $0x1d8] sm:$0xff]  ;;  %306 = vmatpush.msra.mxu2 %v230_v2  ;;  %v258_v9 = vld [vmem:[#allocation5 + $0x1c8] sm:$0xff]  ;;  %285 = vmatpush.msra.mxu1 %v263_v8  ;;  %v229_v10 = vld [vmem:[#allocation5 + $0xe0] sm:$0xff]  ;;  %s373_s16 = scalar_lea.sflag [#allocation4], %s795_s29  ;;  %s628_s18 = sshra.s32 %s389_s15, 4  ;;  %s629_s18 = int_to_ptr.hbm [resolvable:$true] %s628_s18 }
  0x32   : > { %326 = vmatpush.msra.mxu3 %v262_v3  ;;  %v261_v11 = vld [vmem:[#allocation5 + $0x1e0] sm:$0xff]  ;;  %v227_v12 = vld [vmem:[#allocation5 + $0xd0] sm:$0xff]  ;;  %v224_v14 = vld [vmem:[#allocation5 + $0xb8] sm:$0xff]  ;;  %266 = vmatpush.msra.mxu0 %v229_v10  ;;  %s630_s19 = scalar_lea.hbm %s629_s18, 8  ;;  %s634_s22 = scalar_lea.hbm %s856_s2, 16 }
  0x33   : > { %307 = vmatpush.msra.mxu2 %v228_v4  ;;  %v259_v13 = vld [vmem:[#allocation5 + $0x1d0] sm:$0xff]  ;;  %v256_v15 = vld [vmem:[#allocation5 + $0x1b8] sm:$0xff]  ;;  %286 = vmatpush.msra.mxu1 %v261_v11  ;;  %v225_v16 = vld [vmem:[#allocation5 + $0xc0] sm:$0xff]  ;;  %p631_p1 = scmp.ne.s32.totalorder %s629_s18, %s630_s19  ;;  %p635_p12 = scmp.lt.s32.totalorder %s629_s18, %s856_s2 }
  0x34   : > { %327 = vmatpush.msra.mxu3 %v260_v5  ;;  %v257_v17 = vld [vmem:[#allocation5 + $0x1c0] sm:$0xff]  ;;  %v222_v18 = vld [vmem:[#allocation5 + $0xa8] sm:$0xff]  ;;  %267 = vmatpush.msra.mxu0 %v227_v12  ;;  %v223_v20 = vld [vmem:[#allocation5 + $0xb0] sm:$0xff]  ;;  %p636_p8 = scmp.lt.s32.totalorder %s634_s22, %s630_s19 }
  0x35   : > { %308 = vmatpush.msra.mxu2 %v226_v7  ;;  %v254_v19 = vld [vmem:[#allocation5 + $0x1a8] sm:$0xff]  ;;  %287 = vmatpush.msra.mxu1 %v259_v13  ;;  %v255_v21 = vld [vmem:[#allocation5 + $0x1b0] sm:$0xff]  ;;  %v220_v22 = vld [vmem:[#allocation5 + $0x98] sm:$0xff]  ;;  %p632_p3 = pnand %p631_p1, %p764_p13 }
  0x36   : > { %328 = vmatpush.msra.mxu3 %v258_v9  ;;  %v252_v23 = vld [vmem:[#allocation5 + $0x198] sm:$0xff]  ;;  %268 = vmatpush.msra.mxu0 %v225_v16  ;;  %v221_v24 = vld [vmem:[#allocation5 + $0xa0] sm:$0xff]  ;;  %v218_v26 = vld [vmem:[#allocation5 + $0x88] sm:$0xff]  ;;  %p637_p7 = por %p636_p8, %p635_p12 }
  0x37   : > { %309 = vmatpush.msra.mxu2 %v224_v14  ;;  %288 = vmatpush.msra.mxu1 %v257_v17  ;;  %v253_v25 = vld [vmem:[#allocation5 + $0x1a0] sm:$0xff]  ;;  %v250_v27 = vld [vmem:[#allocation5 + $0x188] sm:$0xff]  ;;  %v219_v28 = vld [vmem:[#allocation5 + $0x90] sm:$0xff]  ;;  %p633_p5 = pneg %p632_p3 }
  0x38   : > { %329 = vmatpush.msra.mxu3 %v256_v15  ;;  %269 = vmatpush.msra.mxu0 %v223_v20  ;;  %v251_v29 = vld [vmem:[#allocation5 + $0x190] sm:$0xff]  ;;  %v216_v30 = vld [vmem:[#allocation5 + $0x78] sm:$0xff]  ;;  %v217_v32 = vld [vmem:[#allocation5 + $0x80] sm:$0xff] }
  0x39   : > { %310 = vmatpush.msra.mxu2 %v222_v18  ;;  %289 = vmatpush.msra.mxu1 %v255_v21  ;;  %v248_v31 = vld [vmem:[#allocation5 + $0x178] sm:$0xff]  ;;  %v249_v33 = vld [vmem:[#allocation5 + $0x180] sm:$0xff]  ;;  %v214_v34 = vld [vmem:[#allocation5 + $0x68] sm:$0xff]  ;;  %p638_p9 = pnand %p637_p7, %p633_p5 }
  0x3a   : > { %330 = vmatpush.msra.mxu3 %v254_v19  ;;  %270 = vmatpush.msra.mxu0 %v221_v24  ;;  %v246_v35 = vld [vmem:[#allocation5 + $0x168] sm:$0xff]  ;;  %v215_v36 = vld [vmem:[#allocation5 + $0x70] sm:$0xff]  ;;  %v212_v38 = vld [vmem:[#allocation5 + $0x58] sm:$0xff] }
  0x3b   : > { %311 = vmatpush.msra.mxu2 %v220_v22  ;;  %290 = vmatpush.msra.mxu1 %v253_v25  ;;  %v247_v37 = vld [vmem:[#allocation5 + $0x170] sm:$0xff]  ;;  %v244_v39 = vld [vmem:[#allocation5 + $0x158] sm:$0xff]  ;;  %v213_v41 = vld [vmem:[#allocation5 + $0x60] sm:$0xff] }
  0x3c   : > { %331 = vmatpush.msra.mxu3 %v252_v23  ;;  %271 = vmatpush.msra.mxu0 %v219_v28  ;;  %v812_v40 = vld [vmem:[%s801_s6] sm:$0xff]  ;;  %v245_v42 = vld [vmem:[#allocation5 + $0x160] sm:$0xff]  ;;  %v210_v43 = vld [vmem:[#allocation5 + $0x48] sm:$0xff] }
  0x3d   : > { %312 = vmatpush.msra.mxu2 %v218_v26  ;;  %291 = vmatpush.msra.mxu1 %v251_v29  ;;  %181 = vst [vmem:[#allocation1] ss:$2 sm:$0xff] %v812_v40  ;;  %v242_v44 = vld [vmem:[#allocation5 + $0x148] sm:$0xff]  ;;  %v211_v45 = vld [vmem:[#allocation5 + $0x50] sm:$0xff]  ;;  %v208_v47 = vld [vmem:[#allocation5 + $0x38] sm:$0xff] }
  0x3e   : > { %332 = vmatpush.msra.mxu3 %v250_v27  ;;  %272 = vmatpush.msra.mxu0 %v217_v32  ;;  %v243_v46 = vld [vmem:[#allocation5 + $0x150] sm:$0xff]  ;;  %v240_v48 = vld [vmem:[#allocation5 + $0x138] sm:$0xff]  ;;  %v209_v49 = vld [vmem:[#allocation5 + $0x40] sm:$0xff] }
  0x3f   : > { %313 = vmatpush.msra.mxu2 %v216_v30  ;;  %292 = vmatpush.msra.mxu1 %v249_v33  ;;  %v241_v50 = vld [vmem:[#allocation5 + $0x140] sm:$0xff]  ;;  %v206_v51 = vld [vmem:[#allocation5 + $0x28] sm:$0xff]  ;;  %v204_v53 = vld [vmem:[#allocation5 + $0x18] sm:$0xff] }
  0x40   : > { %333 = vmatpush.msra.mxu3 %v248_v31  ;;  %273 = vmatpush.msra.mxu0 %v215_v36  ;;  %v238_v52 = vld [vmem:[#allocation5 + $0x128] sm:$0xff]  ;;  %v236_v54 = vld [vmem:[#allocation5 + $0x118] sm:$0xff]  ;;  %v207_v55 = vld [vmem:[#allocation5 + $0x30] sm:$0xff] }
  0x41   : > { %314 = vmatpush.msra.mxu2 %v214_v34  ;;  %293 = vmatpush.msra.mxu1 %v247_v37  ;;  %v239_v56 = vld [vmem:[#allocation5 + $0x130] sm:$0xff]  ;;  %v205_v61 = vld [vmem:[#allocation5 + $0x20] sm:$0xff]  ;;  %v202_v63 = vld [vmem:[#allocation5 + $0x8] sm:$0xff] }
  0x42   : > { %334 = vmatpush.msra.mxu3 %v246_v35  ;;  %274 = vmatpush.msra.mxu0 %v213_v41  ;;  %v237_v62 = vld [vmem:[#allocation5 + $0x120] sm:$0xff]  ;;  %v234_v0 = vld [vmem:[#allocation5 + $0x108] sm:$0xff]  ;;  %v203_v3 = vld [vmem:[#allocation5 + $0x10] sm:$0xff] }
  0x43   : > { %315 = vmatpush.msra.mxu2 %v212_v38  ;;  %294 = vmatpush.msra.mxu1 %v245_v42  ;;  %v235_v4 = vld [vmem:[#allocation5 + $0x110] sm:$0xff]  ;;  %v201_v7 = vld [vmem:[#allocation5] sm:$0xff] }
  0x44   : > { %335 = vmatpush.msra.mxu3 %v244_v39  ;;  %275 = vmatpush.msra.mxu0 %v211_v45  ;;  %v182_v57 = vld.sshfl [vmem:[#allocation1] sm:$0xff pattern:$0x75316420]  ;;  %v183_v58 = vld.sshfl [vmem:[#allocation1 + $0x8] sm:$0xff pattern:$0x75316420] }
  0x45   : > { %316 = vmatpush.msra.mxu2 %v210_v43  ;;  %295 = vmatpush.msra.mxu1 %v243_v46  ;;  %v187_v59 = vsel %vm186_vm0, %v182_v57, 0.0  ;;  %v194_v60 = vsel %vm186_vm0, %v183_v58, 0.0  ;;  %v233_v8 = vld [vmem:[#allocation5 + $0x100] sm:$0xff] }
  0x46   : > { %336 = vmatpush.msra.mxu3 %v242_v44  ;;  %276 = vmatpush.msra.mxu0 %v209_v49  ;;  %v188_v1 = vrot.slane %v187_v59, 4  ;;  %v195_v2 = vrot.slane %v194_v60, 4 }
  0x47   : > { %317 = vmatpush.msra.mxu2 %v208_v47  ;;  %296 = vmatpush.msra.mxu1 %v241_v50 }
  0x48   : > { %337 = vmatpush.msra.mxu3 %v240_v48  ;;  %277 = vmatpush.msra.mxu0 %v207_v55  ;;  %v189_v5 = vadd.f32 %v188_v1, %v187_v59  ;;  %v196_v6 = vadd.f32 %v195_v2, %v194_v60 }
  0x49   : > { %318 = vmatpush.msra.mxu2 %v206_v51  ;;  %297 = vmatpush.msra.mxu1 %v239_v56 }
  0x4a   : > { %338 = vmatpush.msra.mxu3 %v238_v52  ;;  %278 = vmatpush.msra.mxu0 %v205_v61  ;;  %v190_v9 = vrot.slane %v189_v5, 2  ;;  %v197_v10 = vrot.slane %v196_v6, 2 }
  0x4b   : > { %319 = vmatpush.msra.mxu2 %v204_v53  ;;  %298 = vmatpush.msra.mxu1 %v237_v62 }
  0x4c   : > { %339 = vmatpush.msra.mxu3 %v236_v54  ;;  %279 = vmatpush.msra.mxu0 %v203_v3  ;;  %v191_v11 = vadd.f32 %v190_v9, %v189_v5  ;;  %v198_v12 = vadd.f32 %v197_v10, %v196_v6 }
  0x4d   : > { %320 = vmatpush.msra.mxu2 %v202_v63  ;;  %299 = vmatpush.msra.mxu1 %v235_v4 }
  0x4e   : > { %340 = vmatpush.msra.mxu3 %v234_v0  ;;  %280 = vmatpush.msra.mxu0 %v201_v7  ;;  %v192_v13 = vrot.slane %v191_v11, 1  ;;  %v199_v14 = vrot.slane %v198_v12, 1 }
  0x4f   : > { %300 = vmatpush.msra.mxu1 %v233_v8 }
  0x50   : > { %v193_v15 = vadd.f32 %v192_v13, %v191_v11  ;;  %v200_v16 = vadd.f32 %v199_v14, %v198_v12 }
  0x52   : > { %321 = vmatmul.f32.vlgmr.msra.gmra.mxu2 %v193_v15  ;;  %341 = vmatmul.f32.vlgmr.msra.gmra.mxu3 %v200_v16 }
  0x53   : > { %281 = vmatmul.f32.vlgmr.msra.gmra.mxu0 %v193_v15  ;;  %301 = vmatmul.f32.vlgmr.msra.gmra.mxu1 %v200_v16 }
  0xd0   : > { %v282_v17 = vpop.f32.mrf.mxu0  ;;  %v302_v18 = vpop.f32.mrf.mxu1 }
  0xd1   : > { %v303_v19 = vadd.f32 %v302_v18, %v282_v17 }
  0xd3   : > { %v480_v20 = vadd.f32 -0.15, %v303_v19 }
  0xd5   : > { %v322_v21 = vpop.f32.mrf.mxu2  ;;  %v342_v22 = vpop.f32.mrf.mxu3  ;;  %v347_v23 = vmul.f32 %v480_v20, %v480_v20 }
  0xd6   : > { %v343_v24 = vadd.f32 %v342_v22, %v322_v21 }
  0xd7   : > { %v349_v25 = vmul.f32 -1730.1038, %v347_v23 }
  0xd8   : > { %v481_v26 = vadd.f32 -0.15, %v343_v24 }
  0xd9   : > { %v351_v27 = vmul.f32 1.442695, %v349_v25 }
  0xda   : > { %v348_v28 = vmul.f32 %v481_v26, %v481_v26 }
  0xdb   : > { %550 = vpow2.f32 %v351_v27 }
  0xdc   : > { %v350_v29 = vmul.f32 -1730.1038, %v348_v28 }
  0xde   : > { %v353_v30 = vmul.f32 1.442695, %v350_v29 }
  0xe0   : > { %552 = vpow2.f32 %v353_v30 }
  0xe1   : > { %v551_v31 = vpop.eup %550 }
  0xe2   : > { %v355_v32 = vmul.f32 2.0, %v551_v31 }
  0xe4   : > { %v482_v33 = vadd.f32 -1.0, %v355_v32 }
  0xe6   : > { %v553_v34 = vpop.eup %552  ;;  %v359_v37 = vmul.f32 0.1, %v482_v33 }
  0xe7   : > { %v356_v35 = vmul.f32 2.0, %v553_v34 }
  0xe8   : > { %v361_v41 = vperm.slane %v359_v37, 0 }
  0xe9   : > { %v483_v36 = vadd.f32 -1.0, %v356_v35 }
  0xeb   : > { %v360_v38 = vmul.f32 0.1, %v483_v36 }
  0xed   : > { %v362_v39 = vperm.slane %v360_v38, 0 }
  0xef   : > { %v365_v42 = vrot.slane %v362_v39, 4 }
  0xf1   : > { %v366_v43 = vsel %vm186_vm0, %v361_v41, %v365_v42 }
  0xf2   : > { %v368_v44 = vadd.f32 %v366_v43, %v812_v40 }
  0xf4   : > { %v369_v45 = vmax.f32 %v368_v44, 0.0 }
  0xf6   : > { %v370_v46 = vmin.f32 %v369_v45, 1.0 }
  0xf8   : > { %371 = vst [vmem:[%s178_s13] sm:$0xff] %v370_v46 }
  0xf9   : > { %641 = shalt.err (!%p638_p9)
}
  0xfa   : > { %497 = dma.vmem_to_hbm [thread:$0]  (%p764_p13), %s387_s14, 128, %s389_s15, %s373_s16  }
  0xfb PF: > { %s400_s3 = sand.u32 1, %s672_s9   ;;  %p862_p10 = scmp.ge.s32.totalorder %s684_s12, 2 }
  0xfc   : > { %s401_s29 = scalar_lea.sflag [#allocation4], %s400_s3 }
  0xfd   : > { %p508_p11 = pnand %p862_p10, %p769_p4 }
  0xff   : > { %p509_p0 = pneg %p508_p11 }
 0x101   : > { %667 = dma.done.wait (%p509_p0), %s401_s29, 128  }
 0x102   : > { %669 = vsyncadd (%p509_p0), %s401_s29, 4294967168  ;;  %p16_p2 = scmp.ge.s32.totalorder %s744_s23, 4   ;;  %s863_s9 = smov %s676_s10 }
 0x103   : > { %s864_s10 = smov %s680_s11  ;;  %s865_s11 = smov %s756_s26 }
 0x104   : > { %s866_s12 = smov %s744_s23  ;;  %18 = sbr.rel (!%p16_p2) target bundleno = 6 (0x6), region = 77 }
 0x109   :  { %407 = vsyncpa [#allocation3], 1 }
 0x10a   :  { %409 = vsyncpa [#allocation3 + $0x1], 1 }
 0x10b   :  { %410 = vsyncpa [#allocation6], 1 }
 0x10c   :  { %411 = vsyncpa [#allocation4], 1 }
 0x10d   :  { %413 = vsyncpa [#allocation4 + $0x1], 1 }

</bundles_post_ra>
